<compile_context>
chip_gen: v7x
topology: tpu7x:2x2x1
jax: 0.10.0
libtpu: 0.0.40
codegen_flags: <defaults>
</compile_context>

<pallas_src>
import functools
import math

import jax
import jax.numpy as jnp
from jax import lax
from jax.experimental import pallas as pl
from jax.experimental.pallas import tpu as pltpu


def _round_up(x: int, m: int) -> int:
    return ((x + m - 1) // m) * m


def _vmem_capacity_bytes() -> int:
    # Trace-time hardware probe only; the fallback never masks kernel errors.
    try:
        return int(pltpu.get_tpu_info().vmem_capacity_bytes)
    except Exception:
        return 128 << 20  # v5e / v6e capacity


def _gelu_ln_epilogue(y, g_ref, beta_ref, o_ref, *, inv_e, eps,
                      approximate_gelu, embed_dim, e_pad):
    """f32 epilogue: GELU -> two-pass LayerNorm -> affine -> store."""
    if approximate_gelu:
        # tanh form routes the transcendental through the otherwise-idle EUP slot.
        y = jax.nn.gelu(y, approximate=True)
    else:
        # Exact erf GELU (torch.nn.GELU() default). NOTE: this is a long VALU
        # polynomial; pass approximate_gelu=True if tanh-GELU is acceptable.
        y = 0.5 * y * (1.0 + lax.erf(y * (1.0 / math.sqrt(2.0))))

    # Two-pass LayerNorm statistics over the TRUE embed_dim. Padded lane columns
    # are exactly zero pre- and post-GELU, so the mean is unaffected; the centered
    # values are masked before the variance pass.
    mean = jnp.sum(y, axis=-1, keepdims=True) * inv_e
    d = y - mean
    if e_pad != embed_dim:
        col = lax.broadcasted_iota(jnp.int32, y.shape, dimension=1)
        d = jnp.where(col < embed_dim, d, 0.0)
    var = jnp.sum(d * d, axis=-1, keepdims=True) * inv_e
    y_hat = d * lax.rsqrt(var + eps)

    out = (y_hat * g_ref[...].astype(jnp.float32)
           + beta_ref[...].astype(jnp.float32))
    o_ref[...] = out.astype(o_ref.dtype)


def _linear_block_kernel_fused(x_ref, w_ref, b_ref, g_ref, beta_ref, o_ref, *,
                               inv_e, eps, approximate_gelu, embed_dim, e_pad):
    """Untiled-K fast path: single MXU pass, no accumulator scratch / RMW."""
    y = jnp.dot(x_ref[...], w_ref[...], preferred_element_type=jnp.float32)
    y = y + b_ref[...].astype(jnp.float32)
    _gelu_ln_epilogue(y, g_ref, beta_ref, o_ref, inv_e=inv_e, eps=eps,
                      approximate_gelu=approximate_gelu,
                      embed_dim=embed_dim, e_pad=e_pad)


def _linear_block_kernel_ktiled(x_ref, w_ref, b_ref, g_ref, beta_ref, o_ref,
                                acc_ref, *, inv_e, eps, approximate_gelu,
                                embed_dim, e_pad):
    """K-tiled path: f32 VMEM accumulator across the reduction grid axis."""
    k = pl.program_id(1)

    @pl.when(k == 0)
    def _():
        acc_ref[...] = jnp.zeros_like(acc_ref)

    acc_ref[...] += jnp.dot(x_ref[...], w_ref[...],
                            preferred_element_type=jnp.float32)

    @pl.when(k == pl.num_programs(1) - 1)
    def _():
        y = acc_ref[...] + b_ref[...].astype(jnp.float32)
        _gelu_ln_epilogue(y, g_ref, beta_ref, o_ref, inv_e=inv_e, eps=eps,
                          approximate_gelu=approximate_gelu,
                          embed_dim=embed_dim, e_pad=e_pad)


def prepare_linear_block_params(weight, bias, gamma, beta, *,
                                compute_dtype=jnp.bfloat16):
    """One-time parameter prep: transpose W, pad embed_dim to a lane-dense
    multiple of 128, cast W to the MXU compute dtype. Call once, reuse across
    forwards so the transpose/pad HBM traffic is not paid per call."""
    embed_dim, in_features = weight.shape
    w_t = weight.T                                    # (in_features, embed_dim)
    if compute_dtype is not None:
        w_t = w_t.astype(compute_dtype)

    e_pad = _round_up(embed_dim, 128)
    if e_pad != embed_dim:
        dp = e_pad - embed_dim
        w_t = jnp.pad(w_t, ((0, 0), (0, dp)))
        bias = jnp.pad(bias, (0, dp))
        gamma = jnp.pad(gamma, (0, dp))
        beta = jnp.pad(beta, (0, dp))

    return dict(
        w_t=w_t,
        bias=bias.reshape(1, e_pad).astype(jnp.float32),
        gamma=gamma.reshape(1, e_pad).astype(jnp.float32),
        beta=beta.reshape(1, e_pad).astype(jnp.float32),
        embed_dim=int(embed_dim),
        in_features=int(in_features),
        e_pad=int(e_pad),
        compute_dtype=compute_dtype,
    )


def linear_block_apply(x, params, *, tm=256, eps=1e-5, approximate_gelu=False):
    """Fused Linear -> GELU -> LayerNorm. x: (..., in_features) -> (..., embed_dim)."""
    w_t = params["w_t"]
    b2, g2, be2 = params["bias"], params["gamma"], params["beta"]
    embed_dim = params["embed_dim"]
    in_features = params["in_features"]
    e_pad = params["e_pad"]
    compute_dtype = params["compute_dtype"]

    orig_shape = x.shape
    assert orig_shape[-1] == in_features
    out_dtype = x.dtype
    rows = math.prod(orig_shape[:-1])

    x2 = x.reshape(rows, in_features)
    if compute_dtype is not None:
        x2 = x2.astype(compute_dtype)

    itemsize = jnp.dtype(x2.dtype).itemsize
    out_itemsize = jnp.dtype(out_dtype).itemsize

    # ---- Row tiling --------------------------------------------------------
    rows8 = _round_up(max(rows, 1), 8)
    tm_eff = _round_up(min(tm, rows8), 8)
    # Shrink the row tile if padding waste would exceed ~25% of the real rows
    # (avoids a large jnp.pad copy of x and wasted matmul/epilogue work).
    while tm_eff > 8 and 4 * (_round_up(rows8, tm_eff) - rows8) > rows8:
        tm_eff = _round_up(tm_eff // 2, 8)
    # Megacore balance (v7x has 2 TensorCores): give the parallel row axis at
    # least two tiles whenever possible.
    if rows8 // tm_eff < 2 and tm_eff > 8:
        tm_eff = _round_up(max(tm_eff // 2, 8), 8)
    rows_pad = _round_up(rows8, tm_eff)
    if rows_pad != rows:
        x2 = jnp.pad(x2, ((0, rows_pad - rows), (0, 0)))

    # ---- VMEM budget (generation aware) ------------------------------------
    capacity = _vmem_capacity_bytes()
    vmem_cap = capacity * 3 // 4              # never request >75% of physical VMEM
    headroom = 8 << 20                        # compiler-internal scratch headroom
    const_bytes = 2 * 3 * e_pad * 4           # bias / gamma / beta buffers

    k_full = in_features
    full_untiled = (2 * k_full * e_pad * itemsize          # W (double-buffer worst case)
                    + 2 * tm_eff * k_full * itemsize       # x tiles
                    + 2 * tm_eff * e_pad * out_itemsize    # out tiles
                    + const_bytes)

    kernel_args = dict(inv_e=1.0 / float(embed_dim), eps=float(eps),
                       approximate_gelu=bool(approximate_gelu),
                       embed_dim=embed_dim, e_pad=e_pad)

    if full_untiled + headroom <= vmem_cap:
        # ---- Common path: K untiled, no accumulator scratch -----------------
        k_dim = k_full
        vmem_limit = int(min(max(full_untiled + headroom, 32 << 20), vmem_cap))
        out = pl.pallas_call(
            functools.partial(_linear_block_kernel_fused, **kernel_args),
            out_shape=jax.ShapeDtypeStruct((rows_pad, e_pad), out_dtype),
            grid=(rows_pad // tm_eff,),
            in_specs=[
                pl.BlockSpec((tm_eff, k_dim), lambda i: (i, 0)),   # x tile
                pl.BlockSpec((k_dim, e_pad), lambda i: (0, 0)),    # W^T slab
                pl.BlockSpec((1, e_pad), lambda i: (0, 0)),        # bias
                pl.BlockSpec((1, e_pad), lambda i: (0, 0)),        # ln gamma
                pl.BlockSpec((1, e_pad), lambda i: (0, 0)),        # ln beta
            ],
            out_specs=pl.BlockSpec((tm_eff, e_pad), lambda i: (i, 0)),
            compiler_params=pltpu.CompilerParams(
                dimension_semantics=("parallel",),
                vmem_limit_bytes=vmem_limit),
        )(x2, w_t, b2, g2, be2)
    else:
        # ---- Huge-weight path: tile K with an f32 VMEM accumulator ----------
        fixed = (2 * tm_eff * e_pad * out_itemsize
                 + tm_eff * e_pad * 4                      # f32 accumulator
                 + const_bytes)
        budget = max(vmem_cap - headroom - fixed, 4 << 20)
        # Budget BOTH double-buffered streams: 2*tm*tk + 2*tk*E_pad elements.
        tk = (budget // (2 * (tm_eff + e_pad) * itemsize)) // 128 * 128
        tk = int(max(128, min(tk, _round_up(k_full, 128))))
        k_dim = _round_up(k_full, tk)
        if k_dim != k_full:
            x2 = jnp.pad(x2, ((0, 0), (0, k_dim - k_full)))
            w_t = jnp.pad(w_t, ((0, k_dim - k_full), (0, 0)))
        num_k = k_dim // tk
        est_bytes = fixed + 2 * (tm_eff + e_pad) * tk * itemsize
        vmem_limit = int(min(max(est_bytes + headroom, 32 << 20), vmem_cap))

        out = pl.pallas_call(
            functools.partial(_linear_block_kernel_ktiled, **kernel_args),
            out_shape=jax.ShapeDtypeStruct((rows_pad, e_pad), out_dtype),
            grid=(rows_pad // tm_eff, num_k),
            in_specs=[
                pl.BlockSpec((tm_eff, tk), lambda i, k: (i, k)),   # x tile
                pl.BlockSpec((tk, e_pad), lambda i, k: (k, 0)),    # W^T slab
                pl.BlockSpec((1, e_pad), lambda i, k: (0, 0)),     # bias
                pl.BlockSpec((1, e_pad), lambda i, k: (0, 0)),     # ln gamma
                pl.BlockSpec((1, e_pad), lambda i, k: (0, 0)),     # ln beta
            ],
            out_specs=pl.BlockSpec((tm_eff, e_pad), lambda i, k: (i, 0)),
            scratch_shapes=[pltpu.VMEM((tm_eff, e_pad), jnp.float32)],
            compiler_params=pltpu.CompilerParams(
                dimension_semantics=("parallel", "arbitrary"),
                vmem_limit_bytes=vmem_limit),
        )(x2, w_t, b2, g2, be2)

    out = out[:rows, :embed_dim]
    return out.reshape(*orig_shape[:-1], embed_dim)


def linear_block(x, weight, bias, gamma, beta, *, compute_dtype=jnp.bfloat16,
                 **kwargs):
    """Convenience wrapper; prefer prepare_linear_block_params + linear_block_apply
    when calling repeatedly so the weight transpose/pad is not redone per call."""
    params = prepare_linear_block_params(weight, bias, gamma, beta,
                                         compute_dtype=compute_dtype)
    return linear_block_apply(x, params, **kwargs)


if __name__ == "__main__":
    # Small shapes consistent with the module's forward (x: (batch, seq, input_prev)).
    batch, seq = 2, 8
    input_prev, embed_dim = 32, 64

    key = jax.random.PRNGKey(0)
    kx, kw, kb = jax.random.split(key, 3)

    x = jax.random.normal(kx, (batch, seq, input_prev), dtype=jnp.float32)

    # Deterministic params mimicking nn.Linear defaults (uniform +-1/sqrt(fan_in)).
    bound = 1.0 / math.sqrt(input_prev)
    weight = jax.random.uniform(kw, (embed_dim, input_prev),
                                minval=-bound, maxval=bound, dtype=jnp.float32)
    bias = jax.random.uniform(kb, (embed_dim,),
                              minval=-bound, maxval=bound, dtype=jnp.float32)
    # LayerNorm affine params: ones / zeros (PyTorch default).
    gamma = jnp.ones((embed_dim,), dtype=jnp.float32)
    beta = jnp.zeros((embed_dim,), dtype=jnp.float32)

    # Pure-JAX reference (Linear -> exact GELU -> LayerNorm), f32 throughout.
    y_ref = x @ weight.T + bias
    y_ref = 0.5 * y_ref * (1.0 + lax.erf(y_ref / math.sqrt(2.0)))
    mu = jnp.mean(y_ref, axis=-1, keepdims=True)
    var = jnp.mean((y_ref - mu) ** 2, axis=-1, keepdims=True)
    y_ref = (y_ref - mu) * lax.rsqrt(var + 1e-5) * gamma + beta

    # Default fast path: bf16 MXU matmul, f32 accumulation + f32 GELU/LN epilogue.
    params_bf16 = prepare_linear_block_params(weight, bias, gamma, beta,
                                              compute_dtype=jnp.bfloat16)
    out_bf16 = linear_block_apply(x, params_bf16)
    jax.block_until_ready(out_bf16)
    assert out_bf16.shape == (batch, seq, embed_dim)
    assert jnp.allclose(out_bf16, y_ref, atol=5e-2, rtol=5e-2), \
        float(jnp.max(jnp.abs(out_bf16 - y_ref)))

    # f32 MXU path for tight numerical validation against the f32 reference.
    params_f32 = prepare_linear_block_params(weight, bias, gamma, beta,
                                             compute_dtype=jnp.float32)
    out_f32 = linear_block_apply(x, params_f32)
    jax.block_until_ready(out_f32)
    assert jnp.allclose(out_f32, y_ref, atol=2e-5, rtol=2e-5), \
        float(jnp.max(jnp.abs(out_f32 - y_ref)))

    # TODO(synk): optional fp8 weight path for v7x inference (weights fp8, acts bf16).
    print("KERNEL_OK")
</pallas_src>

<mosaic_0001>
module attributes {stable_mosaic.version = 11 : i64} {
  func.func @_linear_block_kernel_fused(%arg0: i32, %arg1: memref<8x32xbf16, #tpu.memory_space<vmem>>, %arg2: memref<32x128xbf16, #tpu.memory_space<vmem>>, %arg3: memref<1x128xf32, #tpu.memory_space<vmem>>, %arg4: memref<1x128xf32, #tpu.memory_space<vmem>>, %arg5: memref<1x128xf32, #tpu.memory_space<vmem>>, %arg6: memref<8x128xf32, #tpu.memory_space<vmem>>) attributes {dimension_semantics = [#tpu.dimension_semantics<parallel>], iteration_bounds = array<i64: 2>, scalar_prefetch = 0 : i64, scratch_operands = 0 : i64, tpu.core_type = #tpu.core_type<tc>, window_params = [{transform_indices = @transform_0, window_bounds = array<i64: 8, 32>}, {pipeline_mode = #tpu.pipeline_mode<synchronous>, transform_indices = @transform_1, window_bounds = array<i64: 32, 128>}, {pipeline_mode = #tpu.pipeline_mode<synchronous>, transform_indices = @transform_2, window_bounds = array<i64: 1, 128>}, {pipeline_mode = #tpu.pipeline_mode<synchronous>, transform_indices = @transform_3, window_bounds = array<i64: 1, 128>}, {pipeline_mode = #tpu.pipeline_mode<synchronous>, transform_indices = @transform_4, window_bounds = array<i64: 1, 128>}, {transform_indices = @transform_5, window_bounds = array<i64: 8, 128>}]} {
    %c0 = arith.constant 0 : index
    %c0_0 = arith.constant 0 : index
    %0 = vector.load %arg1[%c0, %c0_0] : memref<8x32xbf16, #tpu.memory_space<vmem>>, vector<8x32xbf16>
    %c0_1 = arith.constant 0 : index
    %c0_2 = arith.constant 0 : index
    %1 = vector.load %arg2[%c0_1, %c0_2] : memref<32x128xbf16, #tpu.memory_space<vmem>>, vector<32x128xbf16>
    %cst = arith.constant dense<0.000000e+00> : vector<8x128xf32>
    %2 = tpu.matmul %0, %1, %cst {dimension_numbers = #tpu.dot_dimension_numbers<[1], [0], [0], [1], [0, 0, 1, 1], [], []>} : vector<8x32xbf16>, vector<32x128xbf16>, vector<8x128xf32> -> vector<8x128xf32>
    %c0_3 = arith.constant 0 : index
    %c0_4 = arith.constant 0 : index
    %3 = vector.load %arg3[%c0_3, %c0_4] : memref<1x128xf32, #tpu.memory_space<vmem>>, vector<1x128xf32>
    %4 = vector.broadcast %3 : vector<1x128xf32> to vector<8x128xf32>
    %5 = arith.addf %2, %4 : vector<8x128xf32>
    %cst_5 = arith.constant 5.000000e-01 : f32
    %6 = vector.broadcast %cst_5 : f32 to vector<8x128xf32>
    %7 = arith.mulf %6, %5 : vector<8x128xf32>
    %cst_6 = arith.constant 0.707106769 : f32
    %8 = vector.broadcast %cst_6 : f32 to vector<8x128xf32>
    %9 = arith.mulf %5, %8 : vector<8x128xf32>
    %10 = math.erf %9 : vector<8x128xf32>
    %cst_7 = arith.constant 1.000000e+00 : f32
    %11 = vector.broadcast %cst_7 : f32 to vector<8x128xf32>
    %12 = arith.addf %11, %10 : vector<8x128xf32>
    %13 = arith.mulf %7, %12 : vector<8x128xf32>
    %cst_8 = arith.constant dense<0.000000e+00> : vector<8xf32>
    %14 = vector.multi_reduction <add>, %13, %cst_8 [1] : vector<8x128xf32> to vector<8xf32>
    %15 = vector.shape_cast %14 : vector<8xf32> to vector<8x1xf32>
    %cst_9 = arith.constant 1.562500e-02 : f32
    %16 = vector.broadcast %cst_9 : f32 to vector<8x1xf32>
    %17 = arith.mulf %15, %16 : vector<8x1xf32>
    %18 = vector.broadcast %17 : vector<8x1xf32> to vector<8x128xf32>
    %19 = arith.subf %13, %18 : vector<8x128xf32>
    %20 = tpu.iota {dimensions = array<i32: 1>} : vector<8x128xi32>
    %c64_i32 = arith.constant 64 : i32
    %21 = vector.broadcast %c64_i32 : i32 to vector<8x128xi32>
    %22 = arith.cmpi slt, %20, %21 : vector<8x128xi32>
    %cst_10 = arith.constant 0.000000e+00 : f32
    %23 = vector.broadcast %cst_10 : f32 to vector<8x128xf32>
    %24 = arith.select %22, %19, %23 : vector<8x128xi1>, vector<8x128xf32>
    %25 = arith.mulf %24, %24 : vector<8x128xf32>
    %cst_11 = arith.constant dense<0.000000e+00> : vector<8xf32>
    %26 = vector.multi_reduction <add>, %25, %cst_11 [1] : vector<8x128xf32> to vector<8xf32>
    %27 = vector.shape_cast %26 : vector<8xf32> to vector<8x1xf32>
    %cst_12 = arith.constant 1.562500e-02 : f32
    %28 = vector.broadcast %cst_12 : f32 to vector<8x1xf32>
    %29 = arith.mulf %27, %28 : vector<8x1xf32>
    %cst_13 = arith.constant 9.99999974E-6 : f32
    %30 = vector.broadcast %cst_13 : f32 to vector<8x1xf32>
    %31 = arith.addf %29, %30 : vector<8x1xf32>
    %32 = math.rsqrt %31 : vector<8x1xf32>
    %33 = vector.broadcast %32 : vector<8x1xf32> to vector<8x128xf32>
    %34 = arith.mulf %24, %33 : vector<8x128xf32>
    %c0_14 = arith.constant 0 : index
    %c0_15 = arith.constant 0 : index
    %35 = vector.load %arg4[%c0_14, %c0_15] : memref<1x128xf32, #tpu.memory_space<vmem>>, vector<1x128xf32>
    %36 = vector.broadcast %35 : vector<1x128xf32> to vector<8x128xf32>
    %37 = arith.mulf %34, %36 : vector<8x128xf32>
    %c0_16 = arith.constant 0 : index
    %c0_17 = arith.constant 0 : index
    %38 = vector.load %arg5[%c0_16, %c0_17] : memref<1x128xf32, #tpu.memory_space<vmem>>, vector<1x128xf32>
    %39 = vector.broadcast %38 : vector<1x128xf32> to vector<8x128xf32>
    %40 = arith.addf %37, %39 : vector<8x128xf32>
    %c0_18 = arith.constant 0 : index
    %c0_19 = arith.constant 0 : index
    %41 = vector.load %arg6[%c0_18, %c0_19] : memref<8x128xf32, #tpu.memory_space<vmem>>, vector<8x128xf32>
    tpu.vector_store %arg6[%c0_18, %c0_19], %40 {strides = array<i32>} : memref<8x128xf32, #tpu.memory_space<vmem>>, vector<8x128xf32>,
    return
  }
  func.func @transform_0(%arg0: i32) -> (i32, i32) {
    %c0_i32 = arith.constant 0 : i32
    %c0_i32_0 = arith.constant 0 : i32
    return %arg0, %c0_i32 : i32, i32
  }
  func.func @transform_1(%arg0: i32) -> (i32, i32) {
    %c0_i32 = arith.constant 0 : i32
    %c0_i32_0 = arith.constant 0 : i32
    %c0_i32_1 = arith.constant 0 : i32
    return %c0_i32, %c0_i32_0 : i32, i32
  }
  func.func @transform_2(%arg0: i32) -> (i32, i32) {
    %c0_i32 = arith.constant 0 : i32
    %c0_i32_0 = arith.constant 0 : i32
    %c0_i32_1 = arith.constant 0 : i32
    return %c0_i32, %c0_i32_0 : i32, i32
  }
  func.func @transform_3(%arg0: i32) -> (i32, i32) {
    %c0_i32 = arith.constant 0 : i32
    %c0_i32_0 = arith.constant 0 : i32
    %c0_i32_1 = arith.constant 0 : i32
    return %c0_i32, %c0_i32_0 : i32, i32
  }
  func.func @transform_4(%arg0: i32) -> (i32, i32) {
    %c0_i32 = arith.constant 0 : i32
    %c0_i32_0 = arith.constant 0 : i32
    %c0_i32_1 = arith.constant 0 : i32
    return %c0_i32, %c0_i32_0 : i32, i32
  }
  func.func @transform_5(%arg0: i32) -> (i32, i32) {
    %c0_i32 = arith.constant 0 : i32
    %c0_i32_0 = arith.constant 0 : i32
    return %arg0, %c0_i32 : i32, i32
  }
}

</mosaic_0001>

<bundles_post_ra>
// kernel: tpu_custom_call.1
= control target key start
LH: loop header
LB: loop body
LE: loop exit
PB: predicated region body
PF: predicated region fallthrough
CT: control target
= control target key end

     0   :  { %10 = vsyncpa [#allocation3], 0  ;;  %s926_s0 = inlined_call_operand.hbm [shape: bf16[16,32], index: 0, kind: input, shape index: {}]   ;;  %s927_s1 = inlined_call_operand.hbm [shape: bf16[32,128], index: 1, kind: input, shape index: {}]   ;;  %s928_s2 = inlined_call_operand.vmem [shape: f32[1,128], index: 2, kind: input, shape index: {}]   ;;  %s929_s3 = inlined_call_operand.vmem [shape: f32[1,128], index: 3, kind: input, shape index: {}]   ;;  %s930_s4 = inlined_call_operand.vmem [shape: f32[1,128], index: 4, kind: input, shape index: {}]   ;;  %s931_s5 = inlined_call_operand.hbm [shape: f32[16,128], index: 5, kind: output, shape index: {}]  }
   0x1   :  { %12 = vsyncpa [#allocation3 + $0x1], 0 }
   0x2   :  { %13 = vsyncpa [#allocation6], 0 }
   0x3   :  { %14 = vsyncpa [#allocation4], 0 }
   0x4   :  { %16 = vsyncpa [#allocation4 + $0x1], 0  ;;  %s720_s18 = smov 0   ;;  %s722_s19 = smov 0  }
   0x5   :  { %s724_s20 = smov 0   ;;  %s726_s21 = smov 0  }
   0x6 LB: > { %s741_s22 = sadd.s32 4294967295, %s681_s21   ;;  %s455_s23 = sadd.s32 4294967294, %s681_s21   ;;  %s681_s21 = sphi %s726_s21, %s951_s21   ;;  %s677_s20 = sphi %s724_s20, %s950_s20   ;;  %s673_s19 = sphi %s722_s19, %s949_s19   ;;  %s669_s18 = sphi %s720_s18, %s948_s18  }
   0x7   : > { %p42_p0 = scmp.ne.s32.totalorder %s673_s19, %s669_s18  ;;  %p932_p1 = scmp.eq.s32.totalorder %s741_s22, 0 }
   0x8   : > { %p156_p3 = scmp.eq.s32.totalorder %s455_s23, 1  ;;  %p456_p5 = scmp.ge.s32.totalorder %s681_s21, 1 }
   0x9   : > { %p750_p4 = por %p932_p1, %p42_p0  ;;  %p163_p7 = scmp.lt.s32.totalorder %s681_s21, 3 }
   0xa   : > { %p755_p6 = por %p156_p3, %p42_p0  ;;  %s683_s27 = smov [#allocation5]  }
   0xb   : > { %s935_s24 = scalar_select %p750_p4, 1, 0 }
   0xc   : > { %s936_s25 = scalar_select %p755_p6, 1, 0 }
   0xd   : > { %p760_p8 = pnand %p456_p5, %p163_p7  ;;  %s175_s28 = sshll.u32 %s683_s27, 4  ;;  %s764_s28 = int_to_ptr.vmem [resolvable:$true] %s175_s28 }
   0xe   : > { %s776_s30 = sadd.s32 1, %s681_s21   ;;  %s29_s6 = sadd.s32 1, %s677_s20 }
   0xf   : > { %s937_s26 = scalar_select %p760_p8, 1, 0 }
  0x10   : > { %p494_p9 = pneg %p760_p8  ;;  %s26_s7 = ssub.s32 %s681_s21, %s776_s30 }
  0x11   : > { %s553_s10 = scalar_lea.hbm %s927_s1, 256 }
  0x12   : > { %p771_p11 = pnand %p494_p9, %p932_p1  ;;  %p554_p12 = scmp.ne.s32.totalorder %s927_s1, %s553_s10 }
  0x13   : > { %p560_p5 = scmp.lt.u32.totalorder %s553_s10, %s927_s1 }
  0x14   : > { %p555_p13 = pneg %p771_p11 }
  0x16   : > { %p556_p0 = pnand %p555_p13, %p554_p12 }
  0x18   : > { %p557_p3 = pneg %p556_p0 }
  0x1a   : > { %p562_p7 = pnand %p560_p5, %p557_p3 }
  0x1c   : > { %565 = shalt.err (!%p562_p7)
}
  0x1d   : > { %s566_s15 = scalar_lea.vmem %s764_s28, 256  ;;  %p574_p2 = scmp.lt.s32.totalorder %s764_s28, %s764_s28 }
  0x1e   : > { %p567_p9 = scmp.ne.s32.totalorder %s764_s28, %s566_s15  ;;  %p575_p6 = scmp.lt.s32.totalorder %s566_s15, %s566_s15 }
  0x20   : > { %p569_p10 = pnand %p567_p9, %p555_p13  ;;  %p576_p4 = por %p575_p6, %p574_p2 }
  0x22   : > { %p570_p1 = pneg %p569_p10 }
  0x24   : > { %p577_p8 = pnand %p576_p4, %p570_p1 }
  0x26   : > { %580 = shalt.err (!%p577_p8)
}
  0x27   : > { %s684_s16 = smov 64   ;;  %s685_s17 = smov 4  }
  0x28   : > { %497 = dma.hbm_to_vmem [thread:$0]  (!%p771_p11), %s927_s1, 256, %s764_s28, [#allocation6], %s684_s16, %s684_s16, %s685_s17  }
  0x29   : > { %p27_p2 = scmp.eq.s32.totalorder %s26_s7, 0  ;;  %p36_p1 = scmp.ne.s32.totalorder %s677_s20, %s673_s19 }
  0x2a   : > { %p37_p4 = scmp.eq.s32.totalorder %s681_s21, 0  ;;  %p507_p6 = scmp.lt.s32.totalorder %s681_s21, 2 }
  0x2b   : > { %s807_s8 = scalar_select %p27_p2, %s677_s20, %s29_s6  }
  0x2c   : > { %p38_p8 = por %p37_p4, %p36_p1  ;;  %p939_p10 = scmp.eq.s32.totalorder %s741_s22, 1 }
  0x2d   : > { %s198_s10 = sand.u32 1, %s677_s20   ;;  %s460_s11 = sshll.u32 %s681_s21, 6 }
  0x2e   : > { %p811_p12 = por %p939_p10, %p36_p1  ;;  %s459_s12 = sshll.u32 %s198_s10, 2 }
  0x2f   : > { %s820_s14 = scalar_lea.hbm %s926_s0, %s460_s11  ;;  %s202_s28 = scalar_lea.vmem [#allocation2], %s459_s12 }
  0x30   : > { %s209_s6 = sshll.u32 %s202_s28, 4  ;;  %p822_p11 = pnand %p507_p6, %p38_p8  ;;  %s826_s6 = int_to_ptr.vmem [resolvable:$true] %s209_s6 }
  0x31   : > { %s199_s15 = scalar_lea.sflag [#allocation3], %s198_s10  ;;  %s581_s16 = scalar_lea.hbm %s820_s14, 64 }
  0x32   : > { %p582_p13 = scmp.ne.s32.totalorder %s820_s14, %s581_s16  ;;  %p583_p0 = pneg %p822_p11 }
  0x33   : > { %s586_s27 = scalar_lea.hbm %s926_s0, 128  ;;  %p587_p7 = scmp.lt.u32.totalorder %s820_s14, %s926_s0 }
  0x34   : > { %p584_p3 = pnand %p583_p0, %p582_p13  ;;  %p588_p9 = scmp.lt.u32.totalorder %s586_s27, %s581_s16 }
  0x35   : > { %p590_p1 = scmp.lt.u32.totalorder %s581_s16, %s820_s14 }
  0x36   : > { %p585_p5 = pneg %p584_p3  ;;  %p589_p2 = por %p588_p9, %p587_p7 }
  0x38   : > { %p591_p4 = por %p590_p1, %p589_p2 }
  0x3a   : > { %p592_p6 = pnand %p591_p4, %p585_p5 }
  0x3c   : > { %595 = shalt.err (!%p592_p6)
}
  0x3d   : > { %s596_s10 = scalar_lea.vmem %s826_s6, 64  ;;  %s686_s29 = smov [#allocation2]  }
  0x3e   : > { %p597_p8 = scmp.ne.s32.totalorder %s826_s6, %s596_s10  ;;  %s601_s13 = sshll.u32 %s686_s29, 4  ;;  %s602_s13 = int_to_ptr.vmem [resolvable:$false] %s601_s13 }
  0x3f   : > { %s603_s28 = scalar_lea.vmem %s602_s13, 128  ;;  %p604_p3 = scmp.lt.s32.totalorder %s826_s6, %s602_s13 }
  0x40   : > { %p599_p10 = pnand %p597_p8, %p583_p0  ;;  %p605_p7 = scmp.lt.s32.totalorder %s603_s28, %s596_s10 }
  0x42   : > { %p600_p13 = pneg %p599_p10  ;;  %p606_p9 = por %p605_p7, %p604_p3 }
  0x44   : > { %p607_p2 = pnand %p606_p9, %p600_p13 }
  0x46   : > { %610 = shalt.err (!%p607_p2)
}
  0x47   : > { %501 = dma.hbm_to_vmem [thread:$0]  (!%p822_p11), %s820_s14, 64, %s826_s6, %s199_s15  }
  0x48   : > { %p942_p5 = scmp.ne.s32.totalorder %s937_s26, 0 }
  0x49   : > { %s856_s16 = sand.u32 (!%p942_p5), 1, %s673_s19   ;;  %p943_p0 = scmp.ne.s32.totalorder (!%p942_p5), %s935_s24, 0 }
  0x4a   : > { %218 = sbr.rel (%p942_p5) target bundleno = 651 (0x28b), region = 40  ;;  %s462_s17 = sshll.u32 (!%p942_p5), %s856_s16, 2 }
  0x4b   : > { %s221_s23 = scalar_lea.sflag (!%p942_p5), [#allocation3], %s856_s16  ;;  %s224_s27 = scalar_lea.vmem (!%p942_p5), [#allocation2], %s462_s17 }
  0x51   : > { %656 = dma.done.wait (%p943_p0), %s221_s23, 64  }
  0x52   : > { %658 = vsyncadd (%p943_p0), %s221_s23, 4294967232  ;;  %p944_p1 = scmp.eq.s32.totalorder %s741_s22, 0 }
  0x54   : > { %660 = dma.done.wait (%p944_p1), [#allocation6], 256   ;;  %p945_p11 = pmov %p944_p1 }
  0x55   : > { %v687_v0 = vmov 0.0   ;;  %vm688_vm0 = vmmov 0   ;;  %v547_v1 = vld [vmem:[#allocation5] sm:$0xff]   ;;  %v548_v2 = vld [vmem:[#allocation5 + $0x8] sm:$0xff]   ;;  %v256_v3 = vld [vmem:[%s224_s27] sm:$0xf]  ;;  %v333_v15 = vlaneseq }
  0x56   : > { %662 = vsyncadd (%p945_p11), [#allocation6], 4294967040  ;;  %478 = vmatprep.subr.bf16.mxu0 %v687_v0  ;;  %482 = vmatprep.mubr.msk.bf16.mxu0 %vm688_vm0, %v687_v0  ;;  %vm280_vm1 = vcmask 261120   ;;  %v465_v4 = vld [vmem:[%s928_s2] ss:$0 sm:$0xff]  ;;  %s464_s14 = sshll.u32 %s856_s16, 3 }
  0x57   : > { %479 = vmatpush3.bf16.msra.mxu0 %v547_v1  ;;  %v334_v16 = vand.u32 127, %v333_v15  ;;  %v469_v26 = vld [vmem:[%s929_s3] ss:$0 sm:$0xff]  ;;  %s472_s12 = sshll.u32 %s741_s22, 7  ;;  %s254_s10 = scalar_lea.vmem [#allocation7], %s464_s14 }
  0x58   : > { %480 = vmatprep.subr.bf16.mxu0 %v687_v0  ;;  %v470_v28 = vld [vmem:[%s930_s4] ss:$0 sm:$0xff]  ;;  %s375_s29 = sshll.u32 %s254_s10, 4  ;;  %s882_s17 = scalar_lea.hbm %s931_s5, %s472_s12  ;;  %s884_s29 = int_to_ptr.vmem [resolvable:$true] %s375_s29 }
  0x59   : > { %vm335_vm2 = vcmp.lt.s32.totalorder %v334_v16, 64  ;;  %s362_s23 = scalar_lea.sflag [#allocation4], %s856_s16  ;;  %s611_s27 = scalar_lea.vmem %s884_s29, 128 }
  0x5a   : > { %p612_p4 = scmp.ne.s32.totalorder %s884_s29, %s611_s27  ;;  %s689_s22 = smov [#allocation7]  }
  0x5b   : > { %481 = vmatpush3.bf16.msra.mxu0 %v548_v2  ;;  %s615_s24 = sshll.u32 %s689_s22, 4  ;;  %s616_s24 = int_to_ptr.vmem [resolvable:$false] %s615_s24 }
  0x5c   : > { %p613_p6 = pnand %p612_p4, %p811_p12  ;;  %s617_s26 = scalar_lea.vmem %s616_s24, 256 }
  0x5d   : > { %p618_p10 = scmp.lt.s32.totalorder %s884_s29, %s616_s24  ;;  %p619_p13 = scmp.lt.s32.totalorder %s617_s26, %s611_s27 }
  0x5e   : > { %483 = vmatmul.mubr.msk.bf16.vlgmr.msra.gmra.mrb[0].mxu0 %vm280_vm1, %v256_v3  ;;  %p614_p8 = pneg %p613_p6 }
  0x5f   : > { %p620_p3 = por %p619_p13, %p618_p10 }
  0x61   : > { %p621_p7 = pnand %p620_p3, %p614_p8 }
 0x131   : > { %v318_v5 = vpop.f32.mrb[0].mxu0 }
 0x132   : > { %v319_v6 = vadd.f32 %v465_v4, %v318_v5  ;;  %v484_v7 = vpop.f32.mrb[1].mxu0 }
 0x133   : > { %v321_v8 = vpop.f32.mrb[2].mxu0 }
 0x134   : > { %v325_v9 = vmul.f32 0.70710677, %v319_v6  ;;  %v485_v10 = vpop.f32.mrb[3].mxu0  ;;  %v324_v12 = vmul.f32 0.5, %v319_v6 }
 0x136   : > { %549 = verf.f32 %v325_v9 }
 0x140   : > { %v550_v11 = vpop.eup %549 }
 0x141   : > { %v327_v13 = vadd.f32 1.0, %v550_v11 }
 0x143   : > { %v328_v14 = vmul.f32 %v327_v13, %v324_v12 }
 0x145   : > { %329 = vadd.xlane.f32.xlu0 %v328_v14 }
 0x1d2   : > { %v330_v17 = vpop.xlane.xlu0 %329 }
 0x1d3   : > { %v331_v18 = vmul.f32 0.015625, %v330_v17 }
 0x1d5   : > { %v332_v19 = vsub.f32 %v328_v14, %v331_v18 }
 0x1d7   : > { %v336_v20 = vsel %vm335_vm2, %v332_v19, 0.0 }
 0x1d8   : > { %v337_v21 = vmul.f32 %v336_v20, %v336_v20 }
 0x1da   : > { %338 = vadd.xlane.f32.xlu0 %v337_v21 }
 0x267   : > { %v339_v22 = vpop.xlane.xlu0 %338 }
 0x268   : > { %v340_v23 = vmul.f32 0.015625, %v339_v22 }
 0x26a   : > { %v341_v24 = vadd.f32 1e-05, %v340_v23 }
 0x26c   : > { %551 = vrsqrt.f32 %v341_v24 }
 0x276   : > { %v552_v25 = vpop.eup %551 }
 0x277   : > { %v343_v27 = vmul.f32 %v552_v25, %v336_v20 }
 0x279   : > { %v351_v29 = vmul.f32 %v469_v26, %v343_v27 }
 0x27b   : > { %v359_v30 = vadd.f32 %v470_v28, %v351_v29 }
 0x27d   : > { %360 = vst [vmem:[%s254_s10] sm:$0xff] %v359_v30 }
 0x27e   : > { %624 = shalt.err (!%p621_p7)
}
 0x27f   : > { %s625_s16 = scalar_lea.hbm %s882_s17, 128  ;;  %s629_s7 = scalar_lea.hbm %s931_s5, 256 }
 0x280   : > { %p626_p9 = scmp.ne.s32.totalorder %s882_s17, %s625_s16  ;;  %p630_p0 = scmp.lt.u32.totalorder %s882_s17, %s931_s5 }
 0x281   : > { %p631_p1 = scmp.lt.u32.totalorder %s629_s7, %s625_s16  ;;  %p633_p4 = scmp.lt.u32.totalorder %s625_s16, %s882_s17 }
 0x282   : > { %p627_p2 = pnand %p626_p9, %p811_p12 }
 0x283   : > { %p632_p11 = por %p631_p1, %p630_p0 }
 0x284   : > { %p628_p5 = pneg %p627_p2 }
 0x285   : > { %p634_p6 = por %p633_p4, %p632_p11 }
 0x287   : > { %p635_p8 = pnand %p634_p6, %p628_p5 }
 0x289   : > { %638 = shalt.err (!%p635_p8)
}
 0x28a   : > { %492 = dma.vmem_to_hbm [thread:$0]  (%p811_p12), %s884_s29, 128, %s882_s17, %s362_s23  }
 0x28b PF: > { %s387_s12 = sand.u32 1, %s669_s18   ;;  %p946_p10 = scmp.ne.s32.totalorder %s936_s25, 0 }
 0x28c   : > { %p947_p13 = scmp.ge.s32.totalorder %s681_s21, 2  ;;  %s388_s10 = scalar_lea.sflag [#allocation4], %s387_s12 }
 0x28e   : > { %p503_p3 = pnand %p947_p13, %p946_p10 }
 0x290   : > { %664 = dma.done.wait (!%p503_p3), %s388_s10, 128  }
 0x291   : > { %666 = vsyncadd (!%p503_p3), %s388_s10, 4294967168  ;;  %p19_p7 = scmp.ge.s32.totalorder %s776_s30, 4   ;;  %s948_s18 = smov %s673_s19 }
 0x292   : > { %s949_s19 = smov %s677_s20  ;;  %s950_s20 = smov %s807_s8 }
 0x293   : > { %s951_s21 = smov %s776_s30  ;;  %21 = sbr.rel (!%p19_p7) target bundleno = 6 (0x6), region = 89 }
 0x29a   :  { %393 = vsyncpa [#allocation3], 1 }
 0x29b   :  { %395 = vsyncpa [#allocation3 + $0x1], 1 }
 0x29c   :  { %396 = vsyncpa [#allocation6], 1 }
 0x29d   :  { %397 = vsyncpa [#allocation4], 1 }
 0x29e   :  { %399 = vsyncpa [#allocation4 + $0x1], 1 }

</bundles_post_ra>
